<compile_context>
chip_gen: v7x
topology: tpu7x:2x2x1
jax: 0.10.0
libtpu: 0.0.40
codegen_flags: <defaults>
</compile_context>

<pallas_src>
import functools

import jax
import jax.numpy as jnp
from jax.experimental import pallas as pl
from jax.experimental.pallas import tpu as pltpu


# --------------------------------------------------------------------------- #
# Fused Pallas kernel: whole encoder in one body
# --------------------------------------------------------------------------- #
def _encoder_fused_kernel(x_ref, *refs):
    # refs = [w0, b0, w1, b1, ..., w_head, b_head, out_ref]
    *param_refs, out_ref = refs
    n_pairs = len(param_refs) // 2

    h = x_ref[...]                                   # bf16 (bm, K_in)
    # Hidden stack: Linear -> ReLU (Dropout(p=0.0) == identity).
    # Static Python loop: tiny fixed trip count, fully unrolled at trace time.
    for i in range(n_pairs - 1):
        w = param_refs[2 * i][...]                   # bf16 (K, 128)
        b = param_refs[2 * i + 1][...]               # f32  (1, 128)
        acc = jnp.dot(h, w, preferred_element_type=jnp.float32) + b
        h = jnp.maximum(acc, 0.0).astype(jnp.bfloat16)

    # Fused heads: one matmul against concatenated [means | log_vars] weights.
    w_head = param_refs[-2][...]                     # bf16 (128, n_pad)
    b_head = param_refs[-1][...]                     # f32  (1, n_pad)
    y = jnp.dot(h, w_head, preferred_element_type=jnp.float32) + b_head
    out_ref[...] = y.astype(out_ref.dtype)


# --------------------------------------------------------------------------- #
# Parameter init (matches PyTorch nn.Linear default init; W stored as (in,out))
# --------------------------------------------------------------------------- #
def init_linear_params(key, in_dim, out_dim):
    kw, kb = jax.random.split(key)
    bound = 1.0 / jnp.sqrt(jnp.float32(in_dim))
    w = jax.random.uniform(kw, (in_dim, out_dim), jnp.float32, -bound, bound)
    b = jax.random.uniform(kb, (1, out_dim), jnp.float32, -bound, bound)
    return w, b


def init_encoder_params(key, input_dim, num_hidden_layers, num_hidden_units,
                        latent_dim):
    assert len(num_hidden_units) == num_hidden_layers + 1
    keys = jax.random.split(key, num_hidden_layers + 3)
    params = {}
    params["input"] = init_linear_params(keys[0], input_dim, num_hidden_units[0])
    params["hidden"] = []
    for i in range(num_hidden_layers):
        params["hidden"].append(
            init_linear_params(keys[1 + i], num_hidden_units[i],
                               num_hidden_units[i + 1]))
    params["means"] = init_linear_params(keys[-2], num_hidden_units[-1],
                                         latent_dim)
    params["log_vars"] = init_linear_params(keys[-1], num_hidden_units[-1],
                                            latent_dim)
    return params


# --------------------------------------------------------------------------- #
# Helpers
# --------------------------------------------------------------------------- #
def _round_up(x, m):
    return ((x + m - 1) // m) * m


def _choose_block_m(M, block_m):
    """Fixed batch tile; grid has >=2 steps whenever M is large enough."""
    if M <= 16:
        return M                      # single tiny block (full sublane dim)
    half = _round_up(pl.cdiv(M, 2), 16)      # >=2 grid points (v7x megacore)
    return min(_round_up(block_m, 16), half)  # cap to bound VMEM per step


def _pack_params(params, *, lane_dense_output=True):
    """Pad hidden widths to one lane-aligned width; fuse the two heads."""
    layers = [params["input"]] + list(params["hidden"])
    hidden_widths = [w.shape[1] for (w, _) in layers]
    pad_w = _round_up(max(hidden_widths), 128)       # common hidden width

    packed = []
    for li, (w, b) in enumerate(layers):
        in_dim, out_dim = w.shape
        in_pad = in_dim if li == 0 else pad_w        # x's own K is untouched
        wp = jnp.zeros((in_pad, pad_w), jnp.float32).at[:in_dim, :out_dim].set(w)
        bp = jnp.zeros((1, pad_w), jnp.float32).at[:, :out_dim].set(b)
        packed += [wp.astype(jnp.bfloat16), bp]

    wm, bm_ = params["means"]
    wv, bv_ = params["log_vars"]
    kh, latent = wm.shape
    n_out = 2 * latent
    n_pad = _round_up(n_out, 128) if lane_dense_output else n_out
    wh = jnp.zeros((pad_w, n_pad), jnp.float32)
    wh = wh.at[:kh, :latent].set(wm).at[:kh, latent:n_out].set(wv)
    bh = jnp.zeros((1, n_pad), jnp.float32)
    bh = bh.at[:, :latent].set(bm_).at[:, latent:n_out].set(bv_)
    packed += [wh.astype(jnp.bfloat16), bh]
    return packed, latent, n_pad


# --------------------------------------------------------------------------- #
# Fused forward
# --------------------------------------------------------------------------- #
def encoder_forward(params, x, *, block_m=1024, lane_dense_output=True):
    M, K_in = x.shape
    flat_params, latent, n_pad = _pack_params(
        params, lane_dense_output=lane_dense_output)

    bm = _choose_block_m(M, block_m)
    grid = (pl.cdiv(M, bm),)                         # partial last tile is OK

    x_bf16 = x.astype(jnp.bfloat16)

    in_specs = [pl.BlockSpec((bm, K_in), lambda i: (i, 0))]
    for a in flat_params:
        # Constant block index -> fetched once, never re-DMA'd across steps.
        in_specs.append(pl.BlockSpec(a.shape, lambda i: (0, 0)))
    out_spec = pl.BlockSpec((bm, n_pad), lambda i: (i, 0))

    out = pl.pallas_call(
        _encoder_fused_kernel,
        out_shape=jax.ShapeDtypeStruct((M, n_pad), jnp.float32),
        grid=grid,
        in_specs=in_specs,
        out_specs=out_spec,
        compiler_params=pltpu.CompilerParams(
            dimension_semantics=("parallel",)),
    )(x_bf16, *flat_params)

    means = out[:, :latent]
    log_vars = out[:, latent:2 * latent]
    return means, log_vars


# --------------------------------------------------------------------------- #
# Reference (plain JAX, f32) for sanity checking
# --------------------------------------------------------------------------- #
def encoder_forward_ref(params, x):
    w, b = params["input"]
    h = jnp.maximum(x @ w + b, 0.0)
    for (w, b) in params["hidden"]:
        h = jnp.maximum(h @ w + b, 0.0)
    wm, bm_ = params["means"]
    wv, bv_ = params["log_vars"]
    return h @ wm + bm_, h @ wv + bv_


if __name__ == "__main__":
    # Small shapes consistent with the module.
    batch = 8
    input_dim = 32
    num_hidden_layers = 2
    num_hidden_units = [64, 48, 32]   # len == num_hidden_layers + 1
    latent_dim = 16

    key = jax.random.PRNGKey(0)
    k_param, k_x, k_x2 = jax.random.split(key, 3)
    params = init_encoder_params(k_param, input_dim, num_hidden_layers,
                                 num_hidden_units, latent_dim)

    # --- small batch (single block) ---------------------------------------
    x = jax.random.normal(k_x, (batch, input_dim), jnp.float32)
    fwd = jax.jit(encoder_forward)
    means, log_vars = fwd(params, x)
    jax.block_until_ready((means, log_vars))

    means_ref, log_vars_ref = encoder_forward_ref(params, x)
    assert means.shape == (batch, latent_dim)
    assert log_vars.shape == (batch, latent_dim)
    # bf16 matmul inputs with f32 accumulation: loosen tolerance vs f32 ref.
    assert jnp.allclose(means, means_ref, atol=5e-2, rtol=5e-2)
    assert jnp.allclose(log_vars, log_vars_ref, atol=5e-2, rtol=5e-2)

    # --- odd batch exercising the cdiv grid + partial last tile -----------
    x2 = jax.random.normal(k_x2, (37, input_dim), jnp.float32)
    fwd2 = jax.jit(functools.partial(encoder_forward, block_m=16))
    m2, lv2 = fwd2(params, x2)
    jax.block_until_ready((m2, lv2))
    m2_ref, lv2_ref = encoder_forward_ref(params, x2)
    assert m2.shape == (37, latent_dim) and lv2.shape == (37, latent_dim)
    assert jnp.allclose(m2, m2_ref, atol=5e-2, rtol=5e-2)
    assert jnp.allclose(lv2, lv2_ref, atol=5e-2, rtol=5e-2)

    print("KERNEL_OK")
</pallas_src>

<mosaic_0001>
module attributes {stable_mosaic.version = 11 : i64} {
  func.func @_encoder_fused_kernel(%arg0: i32, %arg1: memref<8x32xbf16, #tpu.memory_space<vmem>>, %arg2: memref<32x128xbf16, #tpu.memory_space<vmem>>, %arg3: memref<1x128xf32, #tpu.memory_space<vmem>>, %arg4: memref<128x128xbf16, #tpu.memory_space<vmem>>, %arg5: memref<1x128xf32, #tpu.memory_space<vmem>>, %arg6: memref<128x128xbf16, #tpu.memory_space<vmem>>, %arg7: memref<1x128xf32, #tpu.memory_space<vmem>>, %arg8: memref<128x128xbf16, #tpu.memory_space<vmem>>, %arg9: memref<1x128xf32, #tpu.memory_space<vmem>>, %arg10: memref<8x128xf32, #tpu.memory_space<vmem>>) attributes {dimension_semantics = [#tpu.dimension_semantics<parallel>], iteration_bounds = array<i64: 1>, scalar_prefetch = 0 : i64, scratch_operands = 0 : i64, tpu.core_type = #tpu.core_type<tc>, window_params = [{transform_indices = @transform_0, window_bounds = array<i64: 8, 32>}, {pipeline_mode = #tpu.pipeline_mode<synchronous>, transform_indices = @transform_1, window_bounds = array<i64: 32, 128>}, {pipeline_mode = #tpu.pipeline_mode<synchronous>, transform_indices = @transform_2, window_bounds = array<i64: 1, 128>}, {pipeline_mode = #tpu.pipeline_mode<synchronous>, transform_indices = @transform_3, window_bounds = array<i64: 128, 128>}, {pipeline_mode = #tpu.pipeline_mode<synchronous>, transform_indices = @transform_4, window_bounds = array<i64: 1, 128>}, {pipeline_mode = #tpu.pipeline_mode<synchronous>, transform_indices = @transform_5, window_bounds = array<i64: 128, 128>}, {pipeline_mode = #tpu.pipeline_mode<synchronous>, transform_indices = @transform_6, window_bounds = array<i64: 1, 128>}, {pipeline_mode = #tpu.pipeline_mode<synchronous>, transform_indices = @transform_7, window_bounds = array<i64: 128, 128>}, {pipeline_mode = #tpu.pipeline_mode<synchronous>, transform_indices = @transform_8, window_bounds = array<i64: 1, 128>}, {transform_indices = @transform_9, window_bounds = array<i64: 8, 128>}]} {
    %c0 = arith.constant 0 : index
    %c0_0 = arith.constant 0 : index
    %0 = vector.load %arg1[%c0, %c0_0] : memref<8x32xbf16, #tpu.memory_space<vmem>>, vector<8x32xbf16>
    %c0_1 = arith.constant 0 : index
    %c0_2 = arith.constant 0 : index
    %1 = vector.load %arg2[%c0_1, %c0_2] : memref<32x128xbf16, #tpu.memory_space<vmem>>, vector<32x128xbf16>
    %c0_3 = arith.constant 0 : index
    %c0_4 = arith.constant 0 : index
    %2 = vector.load %arg3[%c0_3, %c0_4] : memref<1x128xf32, #tpu.memory_space<vmem>>, vector<1x128xf32>
    %cst = arith.constant dense<0.000000e+00> : vector<8x128xf32>
    %3 = tpu.matmul %0, %1, %cst {dimension_numbers = #tpu.dot_dimension_numbers<[1], [0], [0], [1], [0, 0, 1, 1], [], []>} : vector<8x32xbf16>, vector<32x128xbf16>, vector<8x128xf32> -> vector<8x128xf32>
    %4 = vector.broadcast %2 : vector<1x128xf32> to vector<8x128xf32>
    %5 = arith.addf %3, %4 : vector<8x128xf32>
    %cst_5 = arith.constant 0.000000e+00 : f32
    %6 = vector.broadcast %cst_5 : f32 to vector<8x128xf32>
    %7 = arith.maximumf %5, %6 : vector<8x128xf32>
    %8 = arith.truncf %7 : vector<8x128xf32> to vector<8x128xbf16>
    %c0_6 = arith.constant 0 : index
    %c0_7 = arith.constant 0 : index
    %9 = vector.load %arg4[%c0_6, %c0_7] : memref<128x128xbf16, #tpu.memory_space<vmem>>, vector<128x128xbf16>
    %c0_8 = arith.constant 0 : index
    %c0_9 = arith.constant 0 : index
    %10 = vector.load %arg5[%c0_8, %c0_9] : memref<1x128xf32, #tpu.memory_space<vmem>>, vector<1x128xf32>
    %cst_10 = arith.constant dense<0.000000e+00> : vector<8x128xf32>
    %11 = tpu.matmul %8, %9, %cst_10 {dimension_numbers = #tpu.dot_dimension_numbers<[1], [0], [0], [1], [0, 0, 1, 1], [], []>} : vector<8x128xbf16>, vector<128x128xbf16>, vector<8x128xf32> -> vector<8x128xf32>
    %12 = vector.broadcast %10 : vector<1x128xf32> to vector<8x128xf32>
    %13 = arith.addf %11, %12 : vector<8x128xf32>
    %cst_11 = arith.constant 0.000000e+00 : f32
    %14 = vector.broadcast %cst_11 : f32 to vector<8x128xf32>
    %15 = arith.maximumf %13, %14 : vector<8x128xf32>
    %16 = arith.truncf %15 : vector<8x128xf32> to vector<8x128xbf16>
    %c0_12 = arith.constant 0 : index
    %c0_13 = arith.constant 0 : index
    %17 = vector.load %arg6[%c0_12, %c0_13] : memref<128x128xbf16, #tpu.memory_space<vmem>>, vector<128x128xbf16>
    %c0_14 = arith.constant 0 : index
    %c0_15 = arith.constant 0 : index
    %18 = vector.load %arg7[%c0_14, %c0_15] : memref<1x128xf32, #tpu.memory_space<vmem>>, vector<1x128xf32>
    %cst_16 = arith.constant dense<0.000000e+00> : vector<8x128xf32>
    %19 = tpu.matmul %16, %17, %cst_16 {dimension_numbers = #tpu.dot_dimension_numbers<[1], [0], [0], [1], [0, 0, 1, 1], [], []>} : vector<8x128xbf16>, vector<128x128xbf16>, vector<8x128xf32> -> vector<8x128xf32>
    %20 = vector.broadcast %18 : vector<1x128xf32> to vector<8x128xf32>
    %21 = arith.addf %19, %20 : vector<8x128xf32>
    %cst_17 = arith.constant 0.000000e+00 : f32
    %22 = vector.broadcast %cst_17 : f32 to vector<8x128xf32>
    %23 = arith.maximumf %21, %22 : vector<8x128xf32>
    %24 = arith.truncf %23 : vector<8x128xf32> to vector<8x128xbf16>
    %c0_18 = arith.constant 0 : index
    %c0_19 = arith.constant 0 : index
    %25 = vector.load %arg8[%c0_18, %c0_19] : memref<128x128xbf16, #tpu.memory_space<vmem>>, vector<128x128xbf16>
    %c0_20 = arith.constant 0 : index
    %c0_21 = arith.constant 0 : index
    %26 = vector.load %arg9[%c0_20, %c0_21] : memref<1x128xf32, #tpu.memory_space<vmem>>, vector<1x128xf32>
    %cst_22 = arith.constant dense<0.000000e+00> : vector<8x128xf32>
    %27 = tpu.matmul %24, %25, %cst_22 {dimension_numbers = #tpu.dot_dimension_numbers<[1], [0], [0], [1], [0, 0, 1, 1], [], []>} : vector<8x128xbf16>, vector<128x128xbf16>, vector<8x128xf32> -> vector<8x128xf32>
    %28 = vector.broadcast %26 : vector<1x128xf32> to vector<8x128xf32>
    %29 = arith.addf %27, %28 : vector<8x128xf32>
    %c0_23 = arith.constant 0 : index
    %c0_24 = arith.constant 0 : index
    %30 = vector.load %arg10[%c0_23, %c0_24] : memref<8x128xf32, #tpu.memory_space<vmem>>, vector<8x128xf32>
    tpu.vector_store %arg10[%c0_23, %c0_24], %29 {strides = array<i32>} : memref<8x128xf32, #tpu.memory_space<vmem>>, vector<8x128xf32>,
    return
  }
  func.func @transform_0(%arg0: i32) -> (i32, i32) {
    %c0_i32 = arith.constant 0 : i32
    %c0_i32_0 = arith.constant 0 : i32
    return %arg0, %c0_i32 : i32, i32
  }
  func.func @transform_1(%arg0: i32) -> (i32, i32) {
    %c0_i32 = arith.constant 0 : i32
    %c0_i32_0 = arith.constant 0 : i32
    %c0_i32_1 = arith.constant 0 : i32
    return %c0_i32, %c0_i32_0 : i32, i32
  }
  func.func @transform_2(%arg0: i32) -> (i32, i32) {
    %c0_i32 = arith.constant 0 : i32
    %c0_i32_0 = arith.constant 0 : i32
    %c0_i32_1 = arith.constant 0 : i32
    return %c0_i32, %c0_i32_0 : i32, i32
  }
  func.func @transform_3(%arg0: i32) -> (i32, i32) {
    %c0_i32 = arith.constant 0 : i32
    %c0_i32_0 = arith.constant 0 : i32
    %c0_i32_1 = arith.constant 0 : i32
    return %c0_i32, %c0_i32_0 : i32, i32
  }
  func.func @transform_4(%arg0: i32) -> (i32, i32) {
    %c0_i32 = arith.constant 0 : i32
    %c0_i32_0 = arith.constant 0 : i32
    %c0_i32_1 = arith.constant 0 : i32
    return %c0_i32, %c0_i32_0 : i32, i32
  }
  func.func @transform_5(%arg0: i32) -> (i32, i32) {
    %c0_i32 = arith.constant 0 : i32
    %c0_i32_0 = arith.constant 0 : i32
    %c0_i32_1 = arith.constant 0 : i32
    return %c0_i32, %c0_i32_0 : i32, i32
  }
  func.func @transform_6(%arg0: i32) -> (i32, i32) {
    %c0_i32 = arith.constant 0 : i32
    %c0_i32_0 = arith.constant 0 : i32
    %c0_i32_1 = arith.constant 0 : i32
    return %c0_i32, %c0_i32_0 : i32, i32
  }
  func.func @transform_7(%arg0: i32) -> (i32, i32) {
    %c0_i32 = arith.constant 0 : i32
    %c0_i32_0 = arith.constant 0 : i32
    %c0_i32_1 = arith.constant 0 : i32
    return %c0_i32, %c0_i32_0 : i32, i32
  }
  func.func @transform_8(%arg0: i32) -> (i32, i32) {
    %c0_i32 = arith.constant 0 : i32
    %c0_i32_0 = arith.constant 0 : i32
    %c0_i32_1 = arith.constant 0 : i32
    return %c0_i32, %c0_i32_0 : i32, i32
  }
  func.func @transform_9(%arg0: i32) -> (i32, i32) {
    %c0_i32 = arith.constant 0 : i32
    %c0_i32_0 = arith.constant 0 : i32
    return %arg0, %c0_i32 : i32, i32
  }
}

</mosaic_0001>

<bundles_post_ra>
// kernel: encoder_forward.1
= control target key start
LH: loop header
LB: loop body
LE: loop exit
PB: predicated region body
PF: predicated region fallthrough
CT: control target
= control target key end

     0   :  { %v602_v0 = vmov 0.0   ;;  %vm603_vm0 = vmmov 0   ;;  %vm57_vm1 = vcmask 261120   ;;  %s784_s1 = inlined_call_operand.vmem [shape: bf16[32,128], index: 1, kind: input, shape index: {}]   ;;  %s785_s3 = inlined_call_operand.vmem [shape: bf16[128,128], index: 3, kind: input, shape index: {}]   ;;  %s786_s0 = inlined_call_operand.vmem [shape: bf16[8,32], index: 0, kind: input, shape index: {}]   ;;  %s787_s5 = inlined_call_operand.vmem [shape: bf16[128,128], index: 5, kind: input, shape index: {}]   ;;  %s788_s2 = inlined_call_operand.vmem [shape: f32[1,128], index: 2, kind: input, shape index: {}]   ;;  %s789_s7 = inlined_call_operand.vmem [shape: bf16[128,128], index: 7, kind: input, shape index: {}]   ;;  %s790_s4 = inlined_call_operand.vmem [shape: f32[1,128], index: 4, kind: input, shape index: {}]   ;;  %s791_s6 = inlined_call_operand.vmem [shape: f32[1,128], index: 6, kind: input, shape index: {}]   ;;  %s792_s8 = inlined_call_operand.vmem [shape: f32[1,128], index: 8, kind: input, shape index: {}]   ;;  %s793_s9 = inlined_call_operand.vmem [shape: f32[8,128], index: 9, kind: output, shape index: {}]  }
   0x1   :  { %506 = vmatprep.subr.bf16.mxu0 %v602_v0  ;;  %v576_v1 = vld [vmem:[%s784_s1] sm:$0xff]   ;;  %510 = vmatprep.mubr.msk.bf16.mxu0 %vm603_vm0, %v602_v0  ;;  %v577_v2 = vld [vmem:[%s784_s1 + $0x8] sm:$0xff]   ;;  %v580_v6 = vld [vmem:[%s785_s3 + $0x10] sm:$0xff]  }
   0x2   :  { %514 = vmatprep.subr.bf16.mxu1 %v602_v0  ;;  %530 = vmatprep.mubr.msk.bf16.mxu1 %vm603_vm0, %v602_v0  ;;  %v578_v3 = vld [vmem:[%s785_s3] sm:$0xff]   ;;  %v579_v4 = vld [vmem:[%s785_s3 + $0x8] sm:$0xff]   ;;  %v581_v7 = vld [vmem:[%s785_s3 + $0x18] sm:$0xff]  }
   0x3   :  { %507 = vmatpush3.bf16.msra.mxu0 %v576_v1  ;;  %515 = vmatpush3.bf16.msra.mxu1 %v578_v3  ;;  %v33_v5 = vld [vmem:[%s786_s0] sm:$0xf]  ;;  %v583_v9 = vld [vmem:[%s785_s3 + $0x28] sm:$0xff]   ;;  %v584_v10 = vld [vmem:[%s785_s3 + $0x30] sm:$0xff]  }
   0x4   :  { %508 = vmatprep.subr.bf16.mxu0 %v602_v0  ;;  %516 = vmatprep.subr.bf16.mxu1 %v602_v0  ;;  %v582_v8 = vld [vmem:[%s785_s3 + $0x20] sm:$0xff]   ;;  %v585_v11 = vld [vmem:[%s785_s3 + $0x38] sm:$0xff]   ;;  %v587_v13 = vld [vmem:[%s787_s5 + $0x8] sm:$0xff]  }
   0x5   :  { %v586_v12 = vld [vmem:[%s787_s5] sm:$0xff]   ;;  %v588_v14 = vld [vmem:[%s787_s5 + $0x10] sm:$0xff]   ;;  %v589_v15 = vld [vmem:[%s787_s5 + $0x18] sm:$0xff]  }
   0x6   :  { %v590_v16 = vld [vmem:[%s787_s5 + $0x20] sm:$0xff]   ;;  %v591_v17 = vld [vmem:[%s787_s5 + $0x28] sm:$0xff]   ;;  %v592_v26 = vld [vmem:[%s787_s5 + $0x30] sm:$0xff]  }
   0x7   :  { %509 = vmatpush3.bf16.msra.mxu0 %v577_v2  ;;  %517 = vmatpush3.bf16.msra.mxu1 %v579_v4  ;;  %v445_v18 = vld [vmem:[%s788_s2] ss:$0 sm:$0xff]  ;;  %v593_v27 = vld [vmem:[%s787_s5 + $0x38] sm:$0xff]   ;;  %v595_v29 = vld [vmem:[%s789_s7 + $0x8] sm:$0xff]  }
   0x8   :  { %534 = vmatprep.subr.bf16.mxu0 %v602_v0  ;;  %518 = vmatprep.subr.bf16.mxu1 %v602_v0  ;;  %v594_v28 = vld [vmem:[%s789_s7] sm:$0xff]   ;;  %v596_v30 = vld [vmem:[%s789_s7 + $0x10] sm:$0xff]   ;;  %v597_v31 = vld [vmem:[%s789_s7 + $0x18] sm:$0xff]  }
   0x9   :  { %v598_v32 = vld [vmem:[%s789_s7 + $0x20] sm:$0xff]   ;;  %v599_v33 = vld [vmem:[%s789_s7 + $0x28] sm:$0xff]   ;;  %v600_v42 = vld [vmem:[%s789_s7 + $0x30] sm:$0xff]  }
   0xa   :  { %511 = vmatmul.mubr.msk.bf16.vlgmr.msra.gmra.mrb[0].mxu0 %vm57_vm1, %v33_v5  ;;  %v449_v34 = vld [vmem:[%s790_s4] ss:$0 sm:$0xff]  ;;  %v601_v43 = vld [vmem:[%s789_s7 + $0x38] sm:$0xff]  }
   0xb   :  { %550 = vmatprep.mubr.msk.bf16.mxu0 %vm603_vm0, %v602_v0  ;;  %519 = vmatpush3.bf16.msra.mxu1 %v580_v6  ;;  %v458_v44 = vld [vmem:[%s791_s6] ss:$0 sm:$0xff] }
   0xc   :  { %520 = vmatprep.subr.bf16.mxu1 %v602_v0  ;;  %535 = vmatpush3.bf16.msra.mxu0 %v586_v12  ;;  %v467_v52 = vld [vmem:[%s792_s8] ss:$0 sm:$0xff] }
   0xd   :  { %536 = vmatprep.subr.bf16.mxu0 %v602_v0 }
   0xf   :  { %521 = vmatpush3.bf16.msra.mxu1 %v581_v7 }
  0x10   :  { %522 = vmatprep.subr.bf16.mxu1 %v602_v0  ;;  %537 = vmatpush3.bf16.msra.mxu0 %v587_v13 }
  0x11   :  { %538 = vmatprep.subr.bf16.mxu0 %v602_v0 }
  0x13   :  { %523 = vmatpush3.bf16.msra.mxu1 %v582_v8 }
  0x14   :  { %524 = vmatprep.subr.bf16.mxu1 %v602_v0  ;;  %539 = vmatpush3.bf16.msra.mxu0 %v588_v14 }
  0x15   :  { %540 = vmatprep.subr.bf16.mxu0 %v602_v0 }
  0x17   :  { %525 = vmatpush3.bf16.msra.mxu1 %v583_v9 }
  0x18   :  { %526 = vmatprep.subr.bf16.mxu1 %v602_v0  ;;  %541 = vmatpush3.bf16.msra.mxu0 %v589_v15 }
  0x19   :  { %542 = vmatprep.subr.bf16.mxu0 %v602_v0 }
  0x1b   :  { %527 = vmatpush3.bf16.msra.mxu1 %v584_v10 }
  0x1c   :  { %528 = vmatprep.subr.bf16.mxu1 %v602_v0  ;;  %543 = vmatpush3.bf16.msra.mxu0 %v590_v16 }
  0x1d   :  { %544 = vmatprep.subr.bf16.mxu0 %v602_v0 }
  0x1f   :  { %529 = vmatpush3.bf16.msra.mxu1 %v585_v11 }
  0x20   :  { %554 = vmatprep.subr.bf16.mxu1 %v602_v0  ;;  %545 = vmatpush3.bf16.msra.mxu0 %v591_v17 }
  0x21   :  { %546 = vmatprep.subr.bf16.mxu0 %v602_v0 }
  0x24   :  { %547 = vmatpush3.bf16.msra.mxu0 %v592_v26 }
  0x25   :  { %548 = vmatprep.subr.bf16.mxu0 %v602_v0 }
  0x28   :  { %549 = vmatpush3.bf16.msra.mxu0 %v593_v27 }
  0xdd   :  { %v95_v19 = vpop.f32.mrb[0].mxu0 }
  0xde   :  { %v96_v20 = vadd.f32 %v445_v18, %v95_v19  ;;  %v512_v21 = vpop.f32.mrb[1].mxu0 }
  0xdf   :  { %v98_v22 = vpop.f32.mrb[2].mxu0 }
  0xe0   :  { %v101_v23 = vmax.f32 %v96_v20, 0.0  ;;  %v513_v24 = vpop.f32.mrb[3].mxu0 }
  0xe2   :  { %v102_v25 = vpack.c.bf16 %v101_v23, %v101_v23 }
  0xe4   :  { %531 = vmatmul.mubr.bf16.vlgmr.msra.gmra.mrb[0].mxu1 %v102_v25 }
  0xe5   :  { %570 = vmatprep.mubr.msk.bf16.mxu1 %vm603_vm0, %v602_v0  ;;  %555 = vmatpush3.bf16.msra.mxu1 %v594_v28 }
  0xe6   :  { %556 = vmatprep.subr.bf16.mxu1 %v602_v0 }
  0xe9   :  { %557 = vmatpush3.bf16.msra.mxu1 %v595_v29 }
  0xea   :  { %558 = vmatprep.subr.bf16.mxu1 %v602_v0 }
  0xed   :  { %559 = vmatpush3.bf16.msra.mxu1 %v596_v30 }
  0xee   :  { %560 = vmatprep.subr.bf16.mxu1 %v602_v0 }
  0xf1   :  { %561 = vmatpush3.bf16.msra.mxu1 %v597_v31 }
  0xf2   :  { %562 = vmatprep.subr.bf16.mxu1 %v602_v0 }
  0xf5   :  { %563 = vmatpush3.bf16.msra.mxu1 %v598_v32 }
  0xf6   :  { %564 = vmatprep.subr.bf16.mxu1 %v602_v0 }
  0xf9   :  { %565 = vmatpush3.bf16.msra.mxu1 %v599_v33 }
  0xfa   :  { %566 = vmatprep.subr.bf16.mxu1 %v602_v0 }
  0xfd   :  { %567 = vmatpush3.bf16.msra.mxu1 %v600_v42 }
  0xfe   :  { %568 = vmatprep.subr.bf16.mxu1 %v602_v0 }
 0x101   :  { %569 = vmatpush3.bf16.msra.mxu1 %v601_v43 }
 0x1b7   :  { %v208_v35 = vpop.f32.mrb[0].mxu1 }
 0x1b8   :  { %v209_v36 = vadd.f32 %v449_v34, %v208_v35  ;;  %v532_v37 = vpop.f32.mrb[1].mxu1 }
 0x1b9   :  { %v211_v38 = vpop.f32.mrb[2].mxu1 }
 0x1ba   :  { %v214_v39 = vmax.f32 %v209_v36, 0.0  ;;  %v533_v40 = vpop.f32.mrb[3].mxu1 }
 0x1bc   :  { %v215_v41 = vpack.c.bf16 %v214_v39, %v214_v39 }
 0x1be   :  { %551 = vmatmul.mubr.bf16.vlgmr.msra.gmra.mrb[4].mxu0 %v215_v41 }
 0x291   :  { %v321_v45 = vpop.f32.mrb[4].mxu0 }
 0x292   :  { %v322_v46 = vadd.f32 %v458_v44, %v321_v45  ;;  %v552_v47 = vpop.f32.mrb[5].mxu0 }
 0x293   :  { %v324_v48 = vpop.f32.mrb[6].mxu0 }
 0x294   :  { %v327_v49 = vmax.f32 %v322_v46, 0.0  ;;  %v553_v50 = vpop.f32.mrb[7].mxu0 }
 0x296   :  { %v328_v51 = vpack.c.bf16 %v327_v49, %v327_v49 }
 0x298   :  { %571 = vmatmul.mubr.bf16.vlgmr.msra.gmra.mrb[4].mxu1 %v328_v51 }
 0x36b   :  { %v434_v53 = vpop.f32.mrb[4].mxu1 }
 0x36c   :  { %v435_v54 = vadd.f32 %v467_v52, %v434_v53  ;;  %v572_v55 = vpop.f32.mrb[5].mxu1 }
 0x36d   :  { %v437_v56 = vpop.f32.mrb[6].mxu1 }
 0x36e   :  { %440 = vst [vmem:[%s793_s9] sm:$0xff] %v435_v54  ;;  %v573_v57 = vpop.f32.mrb[7].mxu1 }

</bundles_post_ra>
